<compile_context>
chip_gen: v7x
topology: tpu7x:2x2x1
jax: 0.10.0
libtpu: 0.0.40
codegen_flags: <defaults>
</compile_context>

<pallas_src>
import numpy as np
import jax
import jax.numpy as jnp
from jax import lax
from jax.experimental import pallas as pl
from jax.experimental.pallas import tpu as pltpu


# ----------------------------- Pallas kernel ------------------------------ #

def _gather_pack_kernel(idx_ref, total_ref, x_hbm, out_ref, scratch, sems):
    """Gather one block of R packed rows, prefetching the next block.

    idx_ref   : SMEM [N] int32   — source row (in flattened x) for packed row r
    total_ref : SMEM [1] int32   — number of valid packed rows (= sum(lengths))
    x_hbm     : ANY  [N, F]      — flattened input, left in HBM (manual DMA)
    out_ref   : VMEM (R, F)      — output block (pipelined dense store)
    scratch   : VMEM (2, R, F)   — double-buffered gather landing buffer
    sems      : DMA semaphores, shape (2,) — one per scratch slot
    """
    i = pl.program_id(0)
    nblk = pl.num_programs(0)
    R = out_ref.shape[0]                      # static block row count
    total = total_ref[0]

    def n_valid(blk):
        # number of valid packed rows that land in block `blk`
        return jnp.clip(total - blk * R, 0, R)

    def issue(blk, slot):
        nv = n_valid(blk)
        # Rows past the valid range are never read from HBM.
        @pl.loop(0, nv)
        def _start(j):
            src = idx_ref[blk * R + j]
            pltpu.make_async_copy(
                x_hbm.at[pl.ds(src, 1)],
                scratch.at[slot, pl.ds(j, 1)],
                sems.at[slot],
            ).start()

    slot = i & 1

    # Prologue: block 0 must be issued here; every later block was issued one
    # grid step earlier, so its row gathers overlap the previous block's
    # drain + store + output writeback.
    @pl.when(i == 0)
    def _():
        issue(i, slot)

    # Prefetch the next block's rows into the other slot.
    @pl.when(i + 1 < nblk)
    def _():
        issue(i + 1, 1 - slot)

    # Drain the current block: one wait per started copy (identical (1, F)
    # shapes -> identical completion amounts); dst points at the real scratch
    # row so the compiler sees the dependency before the block-wide read.
    nv = n_valid(i)

    @pl.loop(0, nv)
    def _drain(j):
        pltpu.make_async_copy(
            x_hbm.at[pl.ds(0, 1)],
            scratch.at[slot, pl.ds(j, 1)],
            sems.at[slot],
        ).wait()

    # Single dense (R, F) store; rows >= nv form the zero tail.
    rows = lax.broadcasted_iota(jnp.int32, (R, 1), 0)
    block = scratch[slot]
    out_ref[...] = jnp.where(rows < nv, block, jnp.zeros_like(block))


def _choose_block_rows(n_rows, feat, itemsize):
    """Rows per grid step: multiple of 8 (f32 sublane), capped at 256, sized so
    the double-buffered scratch + double-buffered output (~4 * R * F * itemsize)
    stays well inside the scoped VMEM limit on every generation."""
    budget = 8 << 20
    cap = max(8, min(256, budget // max(1, 4 * feat * itemsize)))
    cap = max(8, (cap // 8) * 8)
    # prefer an R that divides the row count exactly (no output padding)
    for cand in (256, 128, 64, 32, 16, 8):
        if cand <= cap and n_rows % cand == 0:
            return cand
    return max(8, min(cap, ((min(n_rows, 256) + 7) // 8) * 8))


def _pack_data_pallas(x_flat, gather_idx, total):
    N, F = x_flat.shape
    R = _choose_block_rows(N, F, x_flat.dtype.itemsize)
    n_blocks = pl.cdiv(N, R)
    n_pad = n_blocks * R
    total_arr = jnp.reshape(total, (1,)).astype(jnp.int32)

    return pl.pallas_call(
        _gather_pack_kernel,
        out_shape=jax.ShapeDtypeStruct((n_pad, F), x_flat.dtype),
        grid_spec=pltpu.PrefetchScalarGridSpec(
            num_scalar_prefetch=2,                      # gather_idx, total
            grid=(n_blocks,),
            in_specs=[pl.BlockSpec(memory_space=pl.ANY)],   # x stays in HBM
            out_specs=pl.BlockSpec((R, F), lambda i, idx_ref, tot_ref: (i, 0)),
            scratch_shapes=[
                pltpu.VMEM((2, R, F), x_flat.dtype),
                pltpu.SemaphoreType.DMA((2,)),
            ]),
        compiler_params=pltpu.CompilerParams(
            # cross-step prefetch carries state between iterations -> arbitrary
            dimension_semantics=("arbitrary",)),
    )(gather_idx, total_arr, x_flat)


# ------------------------------- Glue (JAX) -------------------------------- #

def _packing_indices(lengths, B, T, batch_first):
    """Everything pack_padded_sequence(enforce_sorted=False) needs (cheap scalar glue)."""
    lengths = lengths.astype(jnp.int32)
    sorted_indices = jnp.argsort(-lengths, stable=True)      # descending, stable ties
    sorted_lengths = lengths[sorted_indices]
    unsorted_indices = jnp.argsort(sorted_indices)

    t = jnp.arange(T, dtype=jnp.int32)
    b = jnp.arange(B, dtype=jnp.int32)
    # batch_sizes[t] = number of sequences still alive at time step t
    batch_sizes = jnp.sum(lengths[None, :] > t[:, None], axis=1).astype(jnp.int32)

    valid = b[None, :] < batch_sizes[:, None]                # [T, B]
    if batch_first:                                          # x is [B, T, F] -> row b*T + t
        src = sorted_indices[None, :] * T + t[:, None]
    else:                                                    # x is [T, B, F] -> row t*B + b
        src = t[:, None] * B + sorted_indices[None, :]

    valid_flat = valid.reshape(-1)
    src_flat = src.reshape(-1)
    # stable compaction: valid entries in (t, b) order move to the front,
    # which is exactly PackedSequence.data row order
    order = jnp.argsort(jnp.where(valid_flat, 0, 1), stable=True)
    gather_idx = jnp.where(valid_flat[order], src_flat[order], 0).astype(jnp.int32)
    total = jnp.sum(batch_sizes).astype(jnp.int32)           # = sum(lengths)

    return (gather_idx, total, batch_sizes,
            sorted_indices.astype(jnp.int32),
            unsorted_indices.astype(jnp.int32),
            sorted_lengths)


def pack_sequence(x, lengths, batch_first=True):
    """JAX/Pallas equivalent of PackSequence.forward."""
    if batch_first:
        B, T, F = x.shape
    else:
        T, B, F = x.shape
    N = B * T

    (gather_idx, total, batch_sizes, sorted_indices,
     unsorted_indices, sorted_lengths) = _packing_indices(lengths, B, T, batch_first)

    # Flatten without transposing — the layout is folded into the gather
    # indices, so batch_first=False costs no extra HBM pass.
    x_flat = x.reshape(N, F)
    data = _pack_data_pallas(x_flat, gather_idx, total)[:N]

    packed = (data, batch_sizes, sorted_indices, unsorted_indices)
    return packed, sorted_lengths


# ------------------------------ Reference ---------------------------------- #

def _reference_pack(x_np, lengths_np):
    B, T, F = x_np.shape
    sorted_idx = np.argsort(-lengths_np, kind="stable")
    sorted_len = lengths_np[sorted_idx]
    rows = []
    for t in range(T):
        bs = int(np.sum(lengths_np > t))
        for b in range(bs):
            rows.append(x_np[sorted_idx[b], t, :])
    data_padded = np.zeros((B * T, F), dtype=x_np.dtype)
    if rows:
        data_padded[: len(rows)] = np.stack(rows)
    batch_sizes = np.array([int(np.sum(lengths_np > t)) for t in range(T)],
                           dtype=np.int32)
    return data_padded, batch_sizes, sorted_idx, sorted_len


# --------------------------------- Main ------------------------------------ #

if __name__ == "__main__":
    k0, k1, k2 = jax.random.split(jax.random.PRNGKey(0), 3)

    # --- case 1: batch-first, single block ----------------------------------
    B, T, F = 4, 8, 128
    x = jax.random.normal(k0, (B, T, F), dtype=jnp.float32)
    lengths = jnp.array([5, 8, 3, 6], dtype=jnp.int32)

    (data, batch_sizes, sorted_indices, unsorted_indices), out_lengths = pack_sequence(
        x, lengths, batch_first=True)
    jax.block_until_ready(data)

    ref_data, ref_bs, ref_sorted_idx, ref_sorted_len = _reference_pack(
        np.asarray(x), np.asarray(lengths))
    np.testing.assert_allclose(np.asarray(data), ref_data, rtol=1e-6, atol=1e-6)
    np.testing.assert_array_equal(np.asarray(batch_sizes), ref_bs)
    np.testing.assert_array_equal(np.asarray(sorted_indices), ref_sorted_idx)
    np.testing.assert_array_equal(np.asarray(out_lengths), ref_sorted_len)

    # Time-major input (batch_first=False) goes through the same kernel with
    # the layout folded into the gather indices (no transpose pre-pass).
    x_tm = jnp.transpose(x, (1, 0, 2))
    (data_tm, bs_tm, _, _), _ = pack_sequence(x_tm, lengths, batch_first=False)
    jax.block_until_ready(data_tm)
    np.testing.assert_allclose(np.asarray(data_tm), ref_data, rtol=1e-6, atol=1e-6)
    np.testing.assert_array_equal(np.asarray(bs_tm), ref_bs)

    # --- case 2: multiple blocks (exercises the cross-step DMA prefetch) ----
    B2, T2, F2 = 6, 16, 128
    x2 = jax.random.normal(k1, (B2, T2, F2), dtype=jnp.float32)
    lengths2 = jnp.array([16, 9, 3, 12, 16, 1], dtype=jnp.int32)
    (data2, bs2, si2, _), len2 = pack_sequence(x2, lengths2, batch_first=True)
    jax.block_until_ready(data2)
    r2 = _reference_pack(np.asarray(x2), np.asarray(lengths2))
    np.testing.assert_allclose(np.asarray(data2), r2[0], rtol=1e-6, atol=1e-6)
    np.testing.assert_array_equal(np.asarray(bs2), r2[1])
    np.testing.assert_array_equal(np.asarray(si2), r2[2])
    np.testing.assert_array_equal(np.asarray(len2), r2[3])

    # --- case 3: row count not a multiple of 8 (padded output tail) ---------
    B3, T3, F3 = 3, 5, 128
    x3 = jax.random.normal(k2, (B3, T3, F3), dtype=jnp.float32)
    lengths3 = jnp.array([2, 5, 4], dtype=jnp.int32)
    (data3, bs3, _, _), _ = pack_sequence(x3, lengths3, batch_first=True)
    jax.block_until_ready(data3)
    r3 = _reference_pack(np.asarray(x3), np.asarray(lengths3))
    np.testing.assert_allclose(np.asarray(data3), r3[0], rtol=1e-6, atol=1e-6)
    np.testing.assert_array_equal(np.asarray(bs3), r3[1])

    print("KERNEL_OK")
</pallas_src>

<mosaic_0001>
module attributes {stable_mosaic.version = 11 : i64} {
  func.func @_gather_pack_kernel(%arg0: i32, %arg1: memref<32xi32, #tpu.memory_space<smem>>, %arg2: memref<1xi32, #tpu.memory_space<smem>>, %arg3: memref<32x128xf32, #tpu.memory_space<any>>, %arg4: memref<32x128xf32, #tpu.memory_space<vmem>>, %arg5: memref<2x32x128xf32, #tpu.memory_space<vmem>>, %arg6: memref<2x!tpu.dma_semaphore, #tpu.memory_space<semaphore_mem>>) attributes {dimension_semantics = [#tpu.dimension_semantics<arbitrary>], iteration_bounds = array<i64: 1>, scalar_prefetch = 2 : i64, scratch_operands = 2 : i64, tpu.core_type = #tpu.core_type<tc>, window_params = [{}, {transform_indices = @transform_1, window_bounds = array<i64: 32, 128>}]} {
    %c0 = arith.constant 0 : index
    %0 = memref.load %arg2[%c0] : memref<1xi32, #tpu.memory_space<smem>>
    %c1_i32 = arith.constant 1 : i32
    %1 = arith.andi %arg0, %c1_i32 : i32
    %c0_i32 = arith.constant 0 : i32
    %2 = arith.cmpi eq, %arg0, %c0_i32 : i32
    %3 = arith.extui %2 : i1 to i32
    %c0_i32_0 = arith.constant 0 : i32
    %4 = arith.cmpi ne, %3, %c0_i32_0 : i32
    scf.if %4 {
      %c32_i32_18 = arith.constant 32 : i32
      %30 = arith.muli %arg0, %c32_i32_18 : i32
      %31 = arith.subi %0, %30 : i32
      %c0_i32_19 = arith.constant 0 : i32
      %c32_i32_20 = arith.constant 32 : i32
      %32 = arith.maxsi %c0_i32_19, %31 : i32
      %33 = arith.minsi %c32_i32_20, %32 : i32
      %c0_i32_21 = arith.constant 0 : i32
      %34 = arith.subi %33, %c0_i32_21 : i32
      %c1_i32_22 = arith.constant 1 : i32
      %c1_i32_23 = arith.constant 1 : i32
      %35 = arith.subi %c1_i32_22, %c1_i32_23 : i32
      %36 = arith.addi %34, %35 : i32
      %c1_i32_24 = arith.constant 1 : i32
      %37 = arith.divsi %36, %c1_i32_24 : i32
      %c1_i32_25 = arith.constant 1 : i32
      %c0_i32_26 = arith.constant 0 : i32
      %c0_i32_27 = arith.constant 0 : i32
      %38 = arith.subi %37, %c0_i32_27 : i32
      %39 = arith.addi %c0_i32_27, %38 : i32
      %c1_i32_28 = arith.constant 1 : i32
      scf.for %arg7 = %c0_i32_27 to %39 step %c1_i32_28  : i32 {
        %40 = arith.muli %arg7, %c1_i32_25 : i32
        %41 = arith.addi %c0_i32_26, %40 : i32
        %c32_i32_29 = arith.constant 32 : i32
        %42 = arith.muli %arg0, %c32_i32_29 : i32
        %43 = arith.addi %42, %41 : i32
        %44 = arith.index_cast %43 : i32 to index
        %45 = memref.load %arg1[%44] : memref<32xi32, #tpu.memory_space<smem>>
        %c0_i32_30 = arith.constant 0 : i32
        %46 = tpu.memref_slice %arg3[%45, %c0_i32_30] : memref<32x128xf32, #tpu.memory_space<any>> -> memref<1x128xf32, #tpu.memory_space<any>>
        %c0_i32_31 = arith.constant 0 : i32
        %47 = tpu.memref_slice %arg5[%1, %41, %c0_i32_31] : memref<2x32x128xf32, #tpu.memory_space<vmem>> -> memref<1x1x128xf32, #tpu.memory_space<vmem>>
        %48 = tpu.memref_squeeze %47 : memref<1x1x128xf32, #tpu.memory_space<vmem>> -> memref<1x128xf32, #tpu.memory_space<vmem>>
        %49 = tpu.memref_slice %arg6[%1] : memref<2x!tpu.dma_semaphore, #tpu.memory_space<semaphore_mem>> -> memref<1x!tpu.dma_semaphore, #tpu.memory_space<semaphore_mem>>
        %50 = tpu.memref_squeeze %49 : memref<1x!tpu.dma_semaphore, #tpu.memory_space<semaphore_mem>> -> memref<!tpu.dma_semaphore, #tpu.memory_space<semaphore_mem>>
        tpu.enqueue_dma source(%46 : memref<1x128xf32, #tpu.memory_space<any>>) target(%48 : memref<1x128xf32, #tpu.memory_space<vmem>>) target_semaphore(%50 : memref<!tpu.dma_semaphore, #tpu.memory_space<semaphore_mem>>)
      }
    } else {
    }
    %c1_i32_1 = arith.constant 1 : i32
    %5 = arith.addi %arg0, %c1_i32_1 : i32
    %c1_i32_2 = arith.constant 1 : i32
    %6 = arith.cmpi slt, %5, %c1_i32_2 : i32
    %7 = arith.extui %6 : i1 to i32
    %c0_i32_3 = arith.constant 0 : i32
    %8 = arith.cmpi ne, %7, %c0_i32_3 : i32
    scf.if %8 {
      %c1_i32_18 = arith.constant 1 : i32
      %30 = arith.addi %arg0, %c1_i32_18 : i32
      %c1_i32_19 = arith.constant 1 : i32
      %31 = arith.subi %c1_i32_19, %1 : i32
      %c32_i32_20 = arith.constant 32 : i32
      %32 = arith.muli %30, %c32_i32_20 : i32
      %33 = arith.subi %0, %32 : i32
      %c0_i32_21 = arith.constant 0 : i32
      %c32_i32_22 = arith.constant 32 : i32
      %34 = arith.maxsi %c0_i32_21, %33 : i32
      %35 = arith.minsi %c32_i32_22, %34 : i32
      %c0_i32_23 = arith.constant 0 : i32
      %36 = arith.subi %35, %c0_i32_23 : i32
      %c1_i32_24 = arith.constant 1 : i32
      %c1_i32_25 = arith.constant 1 : i32
      %37 = arith.subi %c1_i32_24, %c1_i32_25 : i32
      %38 = arith.addi %36, %37 : i32
      %c1_i32_26 = arith.constant 1 : i32
      %39 = arith.divsi %38, %c1_i32_26 : i32
      %c1_i32_27 = arith.constant 1 : i32
      %c0_i32_28 = arith.constant 0 : i32
      %c0_i32_29 = arith.constant 0 : i32
      %40 = arith.subi %39, %c0_i32_29 : i32
      %41 = arith.addi %c0_i32_29, %40 : i32
      %c1_i32_30 = arith.constant 1 : i32
      scf.for %arg7 = %c0_i32_29 to %41 step %c1_i32_30  : i32 {
        %42 = arith.muli %arg7, %c1_i32_27 : i32
        %43 = arith.addi %c0_i32_28, %42 : i32
        %c32_i32_31 = arith.constant 32 : i32
        %44 = arith.muli %30, %c32_i32_31 : i32
        %45 = arith.addi %44, %43 : i32
        %46 = arith.index_cast %45 : i32 to index
        %47 = memref.load %arg1[%46] : memref<32xi32, #tpu.memory_space<smem>>
        %c0_i32_32 = arith.constant 0 : i32
        %48 = tpu.memref_slice %arg3[%47, %c0_i32_32] : memref<32x128xf32, #tpu.memory_space<any>> -> memref<1x128xf32, #tpu.memory_space<any>>
        %c0_i32_33 = arith.constant 0 : i32
        %49 = tpu.memref_slice %arg5[%31, %43, %c0_i32_33] : memref<2x32x128xf32, #tpu.memory_space<vmem>> -> memref<1x1x128xf32, #tpu.memory_space<vmem>>
        %50 = tpu.memref_squeeze %49 : memref<1x1x128xf32, #tpu.memory_space<vmem>> -> memref<1x128xf32, #tpu.memory_space<vmem>>
        %51 = tpu.memref_slice %arg6[%31] : memref<2x!tpu.dma_semaphore, #tpu.memory_space<semaphore_mem>> -> memref<1x!tpu.dma_semaphore, #tpu.memory_space<semaphore_mem>>
        %52 = tpu.memref_squeeze %51 : memref<1x!tpu.dma_semaphore, #tpu.memory_space<semaphore_mem>> -> memref<!tpu.dma_semaphore, #tpu.memory_space<semaphore_mem>>
        tpu.enqueue_dma source(%48 : memref<1x128xf32, #tpu.memory_space<any>>) target(%50 : memref<1x128xf32, #tpu.memory_space<vmem>>) target_semaphore(%52 : memref<!tpu.dma_semaphore, #tpu.memory_space<semaphore_mem>>)
      }
    } else {
    }
    %c32_i32 = arith.constant 32 : i32
    %9 = arith.muli %arg0, %c32_i32 : i32
    %10 = arith.subi %0, %9 : i32
    %c0_i32_4 = arith.constant 0 : i32
    %c32_i32_5 = arith.constant 32 : i32
    %11 = arith.maxsi %c0_i32_4, %10 : i32
    %12 = arith.minsi %c32_i32_5, %11 : i32
    %c0_i32_6 = arith.constant 0 : i32
    %13 = arith.subi %12, %c0_i32_6 : i32
    %c1_i32_7 = arith.constant 1 : i32
    %c1_i32_8 = arith.constant 1 : i32
    %14 = arith.subi %c1_i32_7, %c1_i32_8 : i32
    %15 = arith.addi %13, %14 : i32
    %c1_i32_9 = arith.constant 1 : i32
    %16 = arith.divsi %15, %c1_i32_9 : i32
    %c1_i32_10 = arith.constant 1 : i32
    %c0_i32_11 = arith.constant 0 : i32
    %c0_i32_12 = arith.constant 0 : i32
    %17 = arith.subi %16, %c0_i32_12 : i32
    %18 = arith.addi %c0_i32_12, %17 : i32
    %c1_i32_13 = arith.constant 1 : i32
    scf.for %arg7 = %c0_i32_12 to %18 step %c1_i32_13  : i32 {
      %30 = arith.muli %arg7, %c1_i32_10 : i32
      %31 = arith.addi %c0_i32_11, %30 : i32
      %c0_i32_18 = arith.constant 0 : i32
      %c0_i32_19 = arith.constant 0 : i32
      %32 = tpu.memref_slice %arg3[%c0_i32_18, %c0_i32_19] : memref<32x128xf32, #tpu.memory_space<any>> -> memref<1x128xf32, #tpu.memory_space<any>>
      %c0_i32_20 = arith.constant 0 : i32
      %33 = tpu.memref_slice %arg5[%1, %31, %c0_i32_20] : memref<2x32x128xf32, #tpu.memory_space<vmem>> -> memref<1x1x128xf32, #tpu.memory_space<vmem>>
      %34 = tpu.memref_squeeze %33 : memref<1x1x128xf32, #tpu.memory_space<vmem>> -> memref<1x128xf32, #tpu.memory_space<vmem>>
      %35 = tpu.memref_slice %arg6[%1] : memref<2x!tpu.dma_semaphore, #tpu.memory_space<semaphore_mem>> -> memref<1x!tpu.dma_semaphore, #tpu.memory_space<semaphore_mem>>
      %36 = tpu.memref_squeeze %35 : memref<1x!tpu.dma_semaphore, #tpu.memory_space<semaphore_mem>> -> memref<!tpu.dma_semaphore, #tpu.memory_space<semaphore_mem>>
      tpu.wait_dma2 semaphore(%36 : memref<!tpu.dma_semaphore, #tpu.memory_space<semaphore_mem>>) src(%32 : memref<1x128xf32, #tpu.memory_space<any>>) dst(%34 : memref<1x128xf32, #tpu.memory_space<vmem>>)
    }
    %19 = tpu.iota {dimensions = array<i32: 0>} : vector<32x1xi32>
    %20 = arith.index_cast %1 : i32 to index
    %c0_14 = arith.constant 0 : index
    %c0_15 = arith.constant 0 : index
    %21 = vector.load %arg5[%20, %c0_14, %c0_15] : memref<2x32x128xf32, #tpu.memory_space<vmem>>, vector<1x32x128xf32>
    %22 = vector.shape_cast %21 : vector<1x32x128xf32> to vector<32x128xf32>
    %23 = vector.broadcast %12 : i32 to vector<32x1xi32>
    %24 = arith.cmpi slt, %19, %23 : vector<32x1xi32>
    %cst = arith.constant 0.000000e+00 : f32
    %25 = vector.broadcast %cst : f32 to vector<32x128xf32>
    %26 = vector.shape_cast %24 : vector<32x1xi1> to vector<32x1xi1>
    %27 = vector.broadcast %26 : vector<32x1xi1> to vector<32x128xi1>
    %28 = arith.select %27, %22, %25 : vector<32x128xi1>, vector<32x128xf32>
    %c0_16 = arith.constant 0 : index
    %c0_17 = arith.constant 0 : index
    %29 = vector.load %arg4[%c0_16, %c0_17] : memref<32x128xf32, #tpu.memory_space<vmem>>, vector<32x128xf32>
    tpu.vector_store %arg4[%c0_16, %c0_17], %28 {strides = array<i32>} : memref<32x128xf32, #tpu.memory_space<vmem>>, vector<32x128xf32>,
    return
  }
  func.func @transform_1(%arg0: i32, %arg1: memref<32xi32, #tpu.memory_space<smem>>, %arg2: memref<1xi32, #tpu.memory_space<smem>>) -> (i32, i32) {
    %c0_i32 = arith.constant 0 : i32
    %c0_i32_0 = arith.constant 0 : i32
    return %arg0, %c0_i32 : i32, i32
  }
}

</mosaic_0001>

<bundles_post_ra>
// kernel: tpu_custom_call.1
= control target key start
LH: loop header
LB: loop body
LE: loop exit
PB: predicated region body
PF: predicated region fallthrough
CT: control target
= control target key end

     0   :  { %s407_s0 = inlined_call_operand.vmem [shape: s32[32], index: 0, kind: input, shape index: {}]   ;;  %s408_s1 = inlined_call_operand.<no memory space> [shape: s32[1], index: 1, kind: input, shape index: {}]   ;;  %s409_s2 = inlined_call_operand.hbm [shape: f32[32,128], index: 2, kind: input, shape index: {}]   ;;  %s410_s3 = inlined_call_operand.hbm [shape: f32[32,128], index: 3, kind: output, shape index: {}]  }
   0x1   :  { %s8_s14 = sshll.u32 %s407_s0, 4  ;;  %s9_s14 = int_to_ptr.vmem [resolvable:$true] %s8_s14 }
   0x2   :  { %s249_s15 = scalar_lea.vmem %s9_s14, 16  ;;  %p254_p1 = scmp.lt.s32.totalorder %s9_s14, %s9_s14 }
   0x3   :  { %p250_p0 = scmp.ne.s32.totalorder %s9_s14, %s249_s15  ;;  %p255_p2 = scmp.lt.s32.totalorder %s249_s15, %s249_s15 }
   0x5   :  { %p256_p3 = por %p255_p2, %p254_p1 }
   0x7   :  { %p257_p4 = pnand %p256_p3, %p250_p0 }
   0x9   :  { %260 = shalt.err (!%p257_p4)  }
   0xa   :  { %s329_s16 = smov [#allocation5]  }
   0xb   :  { %11 = dma.vmem_to_smem %s9_s14, 16, %s329_s16, [#allocation4] }
   0xc   :  { %315 = dma.done.wait [#allocation4], 16 }
   0xd   :  { %316 = vsyncadd [#allocation4], 4294967280 }
   0xe   :  { %14 = sfence }
   0xf   :  { %15 = vsyncpa [#allocation8], 0  ;;  %p24_p5 = scmp.gt.s32.totalorder %s408_s1, 0  ;;  %p197_p6 = scmp.lt.s32.totalorder %s408_s1, 32 }
  0x11   :  { %s412_s1 = smov (!%p24_p5, %s408_s1), 0 }
  0x12   :  { %s414_s1 = smov (!%p197_p6, %s412_s1), 32 }
  0x13   :  { %p202_p7 = scmp.le.s32.totalorder %s414_s1, 0 }
  0x14   :  { %s371_s22 = smov (!%p202_p7), 0  }
  0x15   :  { %184 = sbr.rel (%p202_p7) target bundleno = 67 (0x43), region = 60 }
  0x1c LB: > { %s35_s23 = sld [smem:[#allocation5 + %s323_s22]]  ;;  %s40_s24 = scalar_lea.vmem [#allocation2], %s323_s22  ;;  %s323_s22 = sphi %s371_s22, %s31_s22  }
  0x1d   : > { %s49_s25 = sshll.u32 %s40_s24, 4  ;;  %s263_s6 = scalar_lea.hbm %s409_s2, 512  ;;  %s50_s25 = int_to_ptr.vmem [resolvable:$true] %s49_s25 }
  0x22   : > { %s203_s26 = sshll.u32 %s35_s23, 4 }
  0x23   : > { %s37_s29 = scalar_lea.hbm %s409_s2, %s203_s26 }
  0x24   : > { %s261_s30 = scalar_lea.hbm %s37_s29, 16  ;;  %p264_p9 = scmp.lt.u32.totalorder %s37_s29, %s409_s2 }
  0x25   : > { %p262_p8 = scmp.ne.s32.totalorder %s37_s29, %s261_s30  ;;  %p265_p10 = scmp.lt.u32.totalorder %s263_s6, %s261_s30 }
  0x26   : > { %p267_p12 = scmp.lt.u32.totalorder %s261_s30, %s37_s29 }
  0x27   : > { %p266_p11 = por %p265_p10, %p264_p9 }
  0x29   : > { %p268_p13 = por %p267_p12, %p266_p11 }
  0x2b   : > { %p269_p0 = pnand %p268_p13, %p262_p8 }
  0x2d   : > { %272 = shalt.err (!%p269_p0)  }
  0x2e   : > { %s273_s9 = scalar_lea.vmem %s50_s25, 16  ;;  %s330_s10 = smov [#allocation2]  }
  0x2f   : > { %p274_p1 = scmp.ne.s32.totalorder %s50_s25, %s273_s9  ;;  %s275_s11 = sshll.u32 %s330_s10, 4  ;;  %s276_s11 = int_to_ptr.vmem [resolvable:$false] %s275_s11 }
  0x30   : > { %s277_s12 = scalar_lea.vmem %s276_s11, 1024  ;;  %p278_p2 = scmp.lt.s32.totalorder %s50_s25, %s276_s11 }
  0x31   : > { %p279_p3 = scmp.lt.s32.totalorder %s277_s12, %s273_s9 }
  0x33   : > { %p280_p4 = por %p279_p3, %p278_p2 }
  0x35   : > { %p281_p5 = pnand %p280_p4, %p274_p1 }
  0x37   : > { %284 = shalt.err (!%p281_p5)  }
  0x38   : > { %52 = dma.hbm_to_vmem [thread:$0]  %s37_s29, 16, %s50_s25, [#allocation3] }
  0x39   : > { %s31_s22 = sadd.s32 1, %s323_s22  }
  0x3a   : > { %p30_p6 = scmp.ge.s32.totalorder %s31_s22, %s414_s1 }
  0x3c   :  { %33 = sbr.rel (!%p30_p6) target bundleno = 28 (0x1c), region = 66 }
  0x43 PF:  { %194 = sbr.rel (%p202_p7) target bundleno = 85 (0x55), region = 82  ;;  %s325_s13 = smov (!%p202_p7), 0  }
  0x4a LB: > { %317 = dma.done.wait [#allocation3], 16  ;;  %s327_s13 = sphi %s325_s13, %s99_s13  }
  0x4b   : > { %318 = vsyncadd [#allocation3], 4294967280  ;;  %s99_s13 = sadd.s32 1, %s327_s13  }
  0x4c   : > { %p98_p8 = scmp.ge.s32.totalorder %s99_s13, %s414_s1 }
  0x4e   :  { %101 = sbr.rel (!%p98_p8) target bundleno = 74 (0x4a), region = 88 }
  0x55 PF:  { %v106_v0 = vlaneseq  ;;  %v117_v1 = vstv %s414_s1  ;;  %s331_s2 = smov [#allocation7]  }
  0x56   :  { %v113_v3 = vld [vmem:[#allocation2] sm:$0xff]  ;;  %s143_s14 = sshll.u32 %s331_s2, 4  ;;  %v114_v5 = vld [vmem:[#allocation2 + $0x8] sm:$0xff]  ;;  %v115_v7 = vld [vmem:[#allocation2 + $0x10] sm:$0xff]  ;;  %s144_s14 = int_to_ptr.vmem [resolvable:$true] %s143_s14 }
  0x57   :  { %v107_v2 = vshrl.u32 %v106_v0, 7  ;;  %v116_v9 = vld [vmem:[#allocation2 + $0x18] sm:$0xff]  ;;  %s285_s1 = scalar_lea.vmem %s144_s14, 512  ;;  %p290_p9 = scmp.lt.s32.totalorder %s144_s14, %s144_s14 }
  0x58   :  { %p286_p7 = scmp.ne.s32.totalorder %s144_s14, %s285_s1  ;;  %p291_p10 = scmp.lt.s32.totalorder %s285_s1, %s285_s1 }
  0x59   :  { %vm118_vm0 = vcmp.lt.s32.totalorder %v107_v2, %v117_v1  ;;  %v108_v4 = vadd.s32 8, %v107_v2  ;;  %v109_v6 = vadd.s32 16, %v107_v2  ;;  %v110_v8 = vadd.s32 24, %v107_v2 }
  0x5a   :  { %v130_v10 = vsel %vm118_vm0, %v113_v3, 0.0  ;;  %p292_p11 = por %p291_p10, %p290_p9 }
  0x5b   :  { %134 = vst [vmem:[#allocation7] sm:$0xff] %v130_v10  ;;  %vm119_vm1 = vcmp.lt.s32.totalorder %v108_v4, %v117_v1  ;;  %vm120_vm2 = vcmp.lt.s32.totalorder %v109_v6, %v117_v1  ;;  %vm121_vm3 = vcmp.lt.s32.totalorder %v110_v8, %v117_v1 }
  0x5c   :  { %v131_v11 = vsel %vm119_vm1, %v114_v5, 0.0  ;;  %v132_v12 = vsel %vm120_vm2, %v115_v7, 0.0  ;;  %v133_v13 = vsel %vm121_vm3, %v116_v9, 0.0  ;;  %p293_p12 = pnand %p292_p11, %p286_p7 }
  0x5d   :  { %135 = vst [vmem:[#allocation7 + $0x8] sm:$0xff] %v131_v11  ;;  %136 = vst [vmem:[#allocation7 + $0x10] sm:$0xff] %v132_v12 }
  0x5e   :  { %137 = vst [vmem:[#allocation7 + $0x18] sm:$0xff] %v133_v13 }
  0x5f   :  { %296 = shalt.err (!%p293_p12)
}
  0x60   :  { %s297_s17 = scalar_lea.hbm %s410_s3, 512 }
  0x61   :  { %p298_p13 = scmp.ne.s32.totalorder %s410_s3, %s297_s17  ;;  %p301_p0 = scmp.lt.u32.totalorder %s297_s17, %s410_s3 }
  0x63   :  { %p303_p1 = pnand %p301_p0, %p298_p13 }
  0x65   :  { %306 = shalt.err (!%p303_p1)
}
  0x66   :  { %s332_s21 = smov 128   ;;  %s333_s22 = smov 8  }
  0x67   :  { %149 = dma.vmem_to_hbm [thread:$0]  %s144_s14, 512, %s410_s3, [#allocation8], %s332_s21, %s332_s21, %s333_s22  }
  0x68   :  { %319 = dma.done.wait [#allocation8], 512  }
  0x69   :  { %320 = vsyncadd [#allocation8], 4294966784 }
  0x6a   :  { %153 = vsyncpa [#allocation8], 1 }
  0x6b   :  { %154 = vsyncmov [#allocation3] }
  0x6e   :  { %s155_s25 = vpop.sfrf %154 }
  0x6f   :  { %p219_p2 = scmp.ne.s32.totalorder %s155_s25, 0 }
  0x71   :  { %159 = shalt.err (%p219_p2)  }
  0x72   :  { %161 = vsyncmov [#allocation3 + $0x1] }
  0x75   :  { %s162_s26 = vpop.sfrf %161 }
  0x76   :  { %p220_p3 = scmp.ne.s32.totalorder %s162_s26, 0 }
  0x78   :  { %166 = shalt.err (%p220_p3)  }

</bundles_post_ra>
